<compile_context>
chip_gen: v6e
topology: v6e:2x2x1
jax: 0.10.0
libtpu: 0.0.40
codegen_flags: <defaults>
</compile_context>

<pallas_src>
import jax
import jax.numpy as jnp
from jax.experimental import pallas as pl
from jax.experimental.pallas import tpu as pltpu
from functools import partial
from math import sqrt

H_PAD = 128            # lane width of the packed parameter buffer / output slab
HDR = 8                # header rows (sublane-aligned) of the packed parameter buffer
P_ROWS = HDR + H_PAD   # 136 rows total (multiple of 8)


def _round8(n):
    return ((n + 7) // 8) * 8


def _cdiv(a, b):
    return (a + b - 1) // b


def _rawnet_kernel(h, x_ref, p_ref, out_ref):
    """h = real hidden width (static). Output lanes: [0,h)=hid1, [h,2h)=hid2, 2h=sigmoid."""
    head = p_ref[0:HDR, :]                       # (8, 128): one sublane-tile load
    w1a, w1b = head[0:1, :], head[1:2, :]        # w1 rows   (real data in lanes [0,h))
    b1 = head[2:3, :]                            # b1        (lanes [0,h))
    b2 = head[3:4, :]                            # b2        (lanes [h,2h), pre-shifted)
    w3r = head[4:5, :]                           # w3^T      (lanes [h,2h), pre-shifted)
    b3 = head[5:6, 0:1]                          # b3 scalar (1,1)

    x = x_ref[...]                               # (TB, 2): only the 2 real input lanes
    x0, x1 = x[:, 0:1], x[:, 1:2]

    # layer 1 (K=2): plain VPU FMAs, no MXU round-trip.  hid1 -> lanes [0,h).
    h1 = jnp.tanh(x0 * w1a + x1 * w1b + b1)      # (TB, 128), zeros outside [0,h)

    # layer 2: the only real matmul (128x128) -> MXU.  w2 is packed so input
    # lanes [0,h) map to output lanes [h,2h): hid2 lands pre-shifted for the
    # fused output slab at zero extra cost.
    # (precision left at TPU default; pass precision=lax.Precision.HIGHEST if
    #  matching an external f32/PyTorch golden tighter than ~1e-6.)
    w2 = p_ref[HDR:HDR + H_PAD, :]               # (128, 128)
    h2 = jnp.tanh(jnp.dot(h1, w2, preferred_element_type=jnp.float32) + b2)

    # layer 3 (N=1): elementwise mul + lane reduction (XLU); sigmoid via the
    # tanh identity -> one EUP push instead of exp + reciprocal.
    logit = jnp.sum(h2 * w3r, axis=-1, keepdims=True) + b3      # (TB, 1)
    sig = 0.5 * (jnp.tanh(0.5 * logit) + 1.0)                   # (TB, 1)

    # Single lane-dense (TB, 128) store: hid1 and hid2 occupy disjoint lanes,
    # the sigmoid output is selected into lane 2h.
    lane = jax.lax.broadcasted_iota(jnp.int32, out_ref.shape, 1)
    out_ref[...] = jnp.where(lane == 2 * h, sig, h1 + h2)


def pack_params(params, h):
    """Pack (w1,b1,w2,b2,w3,b3) into one lane/sublane-aligned (136,128) buffer.

    Layer-2/3 parameters are stored pre-shifted into lanes [h, 2h) so the
    kernel's matmul produces hid2 directly in the packed-output lane group.
    """
    w1, b1, w2, b2, w3, b3 = params
    P = jnp.zeros((P_ROWS, H_PAD), jnp.float32)
    P = P.at[0:2, 0:h].set(w1)                       # w1 rows 0,1  -> lanes [0,h)
    P = P.at[2, 0:h].set(b1[0])                      # b1           -> lanes [0,h)
    P = P.at[3, h:2 * h].set(b2[0])                  # b2           -> lanes [h,2h)
    P = P.at[4, h:2 * h].set(w3[:, 0])               # w3^T         -> lanes [h,2h)
    P = P.at[5, 0].set(b3[0, 0])                     # b3 scalar
    P = P.at[HDR:HDR + h, h:2 * h].set(w2)           # w2: in lanes [0,h) -> out lanes [h,2h)
    return P


def _rawnet_forward_impl(x, params):
    """x: (B, 2) float32. Returns (out (B,1), hid1 (B,H), hid2 (B,H))."""
    H = params[0].shape[1]
    B = x.shape[0]
    assert 2 * H + 1 <= H_PAD, "single-group packed output needs num_hid <= 63"
    # TODO(synk): fall back to a multi-group (B, k*128) output slab for num_hid > 63.

    # Adaptive batch tile: multiple of 8, capped at 1024, >= 2 grid steps whenever
    # the batch allows (DMA/compute pipelining + v7x dual-TensorCore sharding),
    # padding waste kept below one 8-row group per step.
    CAP = 1024
    B8 = _round8(max(B, 1))
    min_steps = 2 if B8 >= 16 else 1
    n_steps = max(_cdiv(B8, CAP), min_steps)
    TB = min(CAP, _round8(_cdiv(B8, n_steps)))
    B_pad = _cdiv(B8, TB) * TB

    x_pad = jnp.zeros((B_pad, 2), jnp.float32).at[:B, :].set(x)
    P = pack_params(params, H)

    slab = pl.pallas_call(
        partial(_rawnet_kernel, H),
        out_shape=jax.ShapeDtypeStruct((B_pad, H_PAD), jnp.float32),
        grid=(B_pad // TB,),
        in_specs=[
            # x: last block dim == full array dim (2) -> legal, no 64x lane inflation.
            pl.BlockSpec((TB, 2), lambda i: (i, 0)),
            # packed params: constant index_map -> DMA'd once, resident in VMEM.
            pl.BlockSpec((P_ROWS, H_PAD), lambda i: (0, 0)),
        ],
        out_specs=pl.BlockSpec((TB, H_PAD), lambda i: (i, 0)),
        compiler_params=pltpu.CompilerParams(
            dimension_semantics=("parallel",)),      # shard batch steps across TCs (v7x)
    )(x_pad, P)

    hid1 = slab[:B, 0:H]
    hid2 = slab[:B, H:2 * H]
    out = slab[:B, 2 * H:2 * H + 1]
    return out, hid1, hid2


rawnet_forward = jax.jit(_rawnet_forward_impl)


def init_params(key, num_hid):
    """Deterministic init mimicking torch.nn.Linear (U(-1/sqrt(fan_in), +))."""
    def linear(key, fan_in, fan_out):
        kw, kb = jax.random.split(key)
        bound = 1.0 / sqrt(fan_in)
        w = jax.random.uniform(kw, (fan_in, fan_out), jnp.float32,
                               minval=-bound, maxval=bound)
        b = jax.random.uniform(kb, (1, fan_out), jnp.float32,
                               minval=-bound, maxval=bound)
        return w, b

    k1, k2, k3 = jax.random.split(key, 3)
    w1, b1 = linear(k1, 2, num_hid)
    w2, b2 = linear(k2, num_hid, num_hid)
    w3, b3 = linear(k3, num_hid, 1)
    return (w1, b1, w2, b2, w3, b3)


def rawnet_reference(x, params):
    w1, b1, w2, b2, w3, b3 = params
    h1 = jnp.tanh(x @ w1 + b1)
    h2 = jnp.tanh(h1 @ w2 + b2)
    out = jax.nn.sigmoid(h2 @ w3 + b3)
    return out, h1, h2


if __name__ == "__main__":
    key = jax.random.PRNGKey(0)
    kx, kp = jax.random.split(key)

    B = 8          # batch of (x, y) spiral points
    NUM_HID = 32   # hidden width

    x = jax.random.normal(kx, (B, 2), dtype=jnp.float32)
    params = init_params(kp, NUM_HID)

    out, hid1, hid2 = rawnet_forward(x, params)
    jax.block_until_ready((out, hid1, hid2))

    # sanity-check against pure-JAX reference (unpadded math)
    ref_out, ref_h1, ref_h2 = rawnet_reference(x, params)
    assert jnp.allclose(out, ref_out, atol=1e-5, rtol=1e-5)
    assert jnp.allclose(hid1, ref_h1, atol=1e-5, rtol=1e-5)
    assert jnp.allclose(hid2, ref_h2, atol=1e-5, rtol=1e-5)

    print("KERNEL_OK")
</pallas_src>

<mosaic_0001>
module attributes {stable_mosaic.version = 11 : i64} {
  func.func @_rawnet_kernel(%arg0: i32, %arg1: memref<8x2xf32, #tpu.memory_space<vmem>>, %arg2: memref<136x128xf32, #tpu.memory_space<vmem>>, %arg3: memref<8x128xf32, #tpu.memory_space<vmem>>) attributes {dimension_semantics = [#tpu.dimension_semantics<parallel>], iteration_bounds = array<i64: 1>, scalar_prefetch = 0 : i64, scratch_operands = 0 : i64, tpu.core_type = #tpu.core_type<tc>, window_params = [{transform_indices = @transform_0, window_bounds = array<i64: 8, 2>}, {pipeline_mode = #tpu.pipeline_mode<synchronous>, transform_indices = @transform_1, window_bounds = array<i64: 136, 128>}, {transform_indices = @transform_2, window_bounds = array<i64: 8, 128>}]} {
    %c0 = arith.constant 0 : index
    %c0_0 = arith.constant 0 : index
    %0 = vector.load %arg2[%c0, %c0_0] : memref<136x128xf32, #tpu.memory_space<vmem>>, vector<8x128xf32>
    %1 = vector.extract_strided_slice %0 {offsets = [0, 0], sizes = [1, 128], strides = [1, 1]} : vector<8x128xf32> to vector<1x128xf32>
    %2 = vector.extract_strided_slice %0 {offsets = [1, 0], sizes = [1, 128], strides = [1, 1]} : vector<8x128xf32> to vector<1x128xf32>
    %3 = vector.extract_strided_slice %0 {offsets = [2, 0], sizes = [1, 128], strides = [1, 1]} : vector<8x128xf32> to vector<1x128xf32>
    %4 = vector.extract_strided_slice %0 {offsets = [3, 0], sizes = [1, 128], strides = [1, 1]} : vector<8x128xf32> to vector<1x128xf32>
    %5 = vector.extract_strided_slice %0 {offsets = [4, 0], sizes = [1, 128], strides = [1, 1]} : vector<8x128xf32> to vector<1x128xf32>
    %6 = vector.extract_strided_slice %0 {offsets = [5, 0], sizes = [1, 1], strides = [1, 1]} : vector<8x128xf32> to vector<1x1xf32>
    %c0_1 = arith.constant 0 : index
    %c0_2 = arith.constant 0 : index
    %7 = vector.load %arg1[%c0_1, %c0_2] : memref<8x2xf32, #tpu.memory_space<vmem>>, vector<8x2xf32>
    %8 = vector.extract_strided_slice %7 {offsets = [0, 0], sizes = [8, 1], strides = [1, 1]} : vector<8x2xf32> to vector<8x1xf32>
    %9 = vector.extract_strided_slice %7 {offsets = [0, 1], sizes = [8, 1], strides = [1, 1]} : vector<8x2xf32> to vector<8x1xf32>
    %10 = vector.broadcast %8 : vector<8x1xf32> to vector<8x128xf32>
    %11 = vector.broadcast %1 : vector<1x128xf32> to vector<8x128xf32>
    %12 = arith.mulf %10, %11 : vector<8x128xf32>
    %13 = vector.broadcast %9 : vector<8x1xf32> to vector<8x128xf32>
    %14 = vector.broadcast %2 : vector<1x128xf32> to vector<8x128xf32>
    %15 = arith.mulf %13, %14 : vector<8x128xf32>
    %16 = arith.addf %12, %15 : vector<8x128xf32>
    %17 = vector.broadcast %3 : vector<1x128xf32> to vector<8x128xf32>
    %18 = arith.addf %16, %17 : vector<8x128xf32>
    %19 = math.tanh %18 : vector<8x128xf32>
    %c8 = arith.constant 8 : index
    %c0_3 = arith.constant 0 : index
    %20 = vector.load %arg2[%c8, %c0_3] : memref<136x128xf32, #tpu.memory_space<vmem>>, vector<128x128xf32>
    %cst = arith.constant dense<0.000000e+00> : vector<8x128xf32>
    %21 = tpu.matmul %19, %20, %cst {dimension_numbers = #tpu.dot_dimension_numbers<[1], [0], [0], [1], [0, 0, 1, 1], [], []>} : vector<8x128xf32>, vector<128x128xf32>, vector<8x128xf32> -> vector<8x128xf32>
    %22 = vector.broadcast %4 : vector<1x128xf32> to vector<8x128xf32>
    %23 = arith.addf %21, %22 : vector<8x128xf32>
    %24 = math.tanh %23 : vector<8x128xf32>
    %25 = vector.broadcast %5 : vector<1x128xf32> to vector<8x128xf32>
    %26 = arith.mulf %24, %25 : vector<8x128xf32>
    %cst_4 = arith.constant dense<0.000000e+00> : vector<8xf32>
    %27 = vector.multi_reduction <add>, %26, %cst_4 [1] : vector<8x128xf32> to vector<8xf32>
    %28 = vector.shape_cast %27 : vector<8xf32> to vector<8x1xf32>
    %29 = vector.broadcast %6 : vector<1x1xf32> to vector<8x1xf32>
    %30 = arith.addf %28, %29 : vector<8x1xf32>
    %cst_5 = arith.constant 5.000000e-01 : f32
    %31 = vector.broadcast %cst_5 : f32 to vector<8x1xf32>
    %32 = arith.mulf %31, %30 : vector<8x1xf32>
    %33 = math.tanh %32 : vector<8x1xf32>
    %cst_6 = arith.constant 1.000000e+00 : f32
    %34 = vector.broadcast %cst_6 : f32 to vector<8x1xf32>
    %35 = arith.addf %33, %34 : vector<8x1xf32>
    %cst_7 = arith.constant 5.000000e-01 : f32
    %36 = vector.broadcast %cst_7 : f32 to vector<8x1xf32>
    %37 = arith.mulf %36, %35 : vector<8x1xf32>
    %38 = tpu.iota {dimensions = array<i32: 1>} : vector<8x128xi32>
    %c64_i32 = arith.constant 64 : i32
    %39 = vector.broadcast %c64_i32 : i32 to vector<8x128xi32>
    %40 = arith.cmpi eq, %38, %39 : vector<8x128xi32>
    %41 = arith.addf %19, %24 : vector<8x128xf32>
    %42 = vector.shape_cast %37 : vector<8x1xf32> to vector<8x1xf32>
    %43 = vector.broadcast %42 : vector<8x1xf32> to vector<8x128xf32>
    %44 = arith.select %40, %43, %41 : vector<8x128xi1>, vector<8x128xf32>
    %c0_8 = arith.constant 0 : index
    %c0_9 = arith.constant 0 : index
    %45 = vector.load %arg3[%c0_8, %c0_9] : memref<8x128xf32, #tpu.memory_space<vmem>>, vector<8x128xf32>
    tpu.vector_store %arg3[%c0_8, %c0_9], %44 {strides = array<i32>} : memref<8x128xf32, #tpu.memory_space<vmem>>, vector<8x128xf32>,
    return
  }
  func.func @transform_0(%arg0: i32) -> (i32, i32) {
    %c0_i32 = arith.constant 0 : i32
    %c0_i32_0 = arith.constant 0 : i32
    return %arg0, %c0_i32 : i32, i32
  }
  func.func @transform_1(%arg0: i32) -> (i32, i32) {
    %c0_i32 = arith.constant 0 : i32
    %c0_i32_0 = arith.constant 0 : i32
    %c0_i32_1 = arith.constant 0 : i32
    return %c0_i32, %c0_i32_0 : i32, i32
  }
  func.func @transform_2(%arg0: i32) -> (i32, i32) {
    %c0_i32 = arith.constant 0 : i32
    %c0_i32_0 = arith.constant 0 : i32
    return %arg0, %c0_i32 : i32, i32
  }
}

</mosaic_0001>

<bundles_post_ra>
// kernel: _rawnet_forward_impl.1
= control target key start
LH: loop header
LB: loop body
LE: loop exit
PB: predicated region body
PF: predicated region fallthrough
CT: control target
= control target key end

     0   :  { %v227_v0 = vmov 0   ;;  %v228_v2 = vmov 0.0   ;;  %v229_v7 = vmov 1   ;;  %vm230_vm0 = vmmov 0   ;;  %s303_s0 = inlined_call_operand.vmem [shape: f32[8,2], index: 0, kind: input, shape index: {}]   ;;  %s304_s1 = inlined_call_operand.vmem [shape: f32[136,128], index: 1, kind: input, shape index: {}]   ;;  %s305_s2 = inlined_call_operand.vmem [shape: f32[8,128], index: 2, kind: output, shape index: {}]  }
   0x1   :  { %217 = vset.pattern.permute.xlu0 %v227_v0  ;;  %v12_v1 = vld [vmem:[%s303_s0] sm:$0xff]  ;;  %178 = vmatprep.subr.mxu0 %v228_v2  ;;  %v53_v4 = vld [vmem:[%s304_s1 + $0x78] sm:$0xff]  ;;  %v52_v5 = vld [vmem:[%s304_s1 + $0x70] sm:$0xff]  ;;  %v18_v20 = vlaneseq }
   0x2   :  { %v54_v3 = vld [vmem:[%s304_s1 + $0x80] sm:$0xff]  ;;  %15 = vperm.xlu0 %217, %v12_v1   ;;  %219 = vset.pattern.permute.xlu1 %v227_v0  ;;  %v51_v6 = vld [vmem:[%s304_s1 + $0x68] sm:$0xff]  ;;  %v49_v9 = vld [vmem:[%s304_s1 + $0x58] sm:$0xff] }
   0x3   :  { %179 = vmatpush3.msra.mxu0 %v54_v3  ;;  %v50_v8 = vld [vmem:[%s304_s1 + $0x60] sm:$0xff]  ;;  %210 = vmatprep.mubr.msk.f32.mxu0 %vm230_vm0, %v228_v2  ;;  %v48_v10 = vld [vmem:[%s304_s1 + $0x50] sm:$0xff]  ;;  %v47_v11 = vld [vmem:[%s304_s1 + $0x48] sm:$0xff]  ;;  %v19_v21 = vshrl.u32 %v18_v20, 7  ;;  %v147_v53 = vand.u32 127, %v18_v20 }
   0x4   :  { %180 = vmatprep.subr.mxu0 %v228_v2  ;;  %v46_v12 = vld [vmem:[%s304_s1 + $0x40] sm:$0xff]  ;;  %v45_v13 = vld [vmem:[%s304_s1 + $0x38] sm:$0xff]  ;;  %v44_v14 = vld [vmem:[%s304_s1 + $0x30] sm:$0xff] }
   0x5   :  { %181 = vmatpush3.msra.mxu0 %v53_v4  ;;  %v43_v15 = vld [vmem:[%s304_s1 + $0x28] sm:$0xff]  ;;  %v42_v16 = vld [vmem:[%s304_s1 + $0x20] sm:$0xff]  ;;  %v41_v17 = vld [vmem:[%s304_s1 + $0x18] sm:$0xff]  ;;  %v20_v22 = vsub.s32 0, %v19_v21  ;;  %v29_v23 = vsub.s32 1, %v19_v21  ;;  %v35_v28 = vsub.s32 2, %v19_v21 }
   0x6   :  { %182 = vmatprep.subr.mxu0 %v228_v2  ;;  %218 = vset.pattern.permute.xlu0 %v229_v7  ;;  %v40_v18 = vld [vmem:[%s304_s1 + $0x10] sm:$0xff]  ;;  %v39_v19 = vld [vmem:[%s304_s1 + $0x8] sm:$0xff]  ;;  %v11_v24 = vld [vmem:[%s304_s1] sm:$0xff]  ;;  %v57_v36 = vsub.s32 3, %v19_v21  ;;  %v132_v41 = vsub.s32 4, %v19_v21  ;;  %v139_v45 = vsub.s32 5, %v19_v21 }
   0x7   :  { %183 = vmatpush3.msra.mxu0 %v52_v5  ;;  %24 = vperm.xlu0 %218, %v12_v1   ;;  %v21_v26 = vrot.slane %v11_v24, %v20_v22  ;;  %v30_v27 = vrot.slane %v11_v24, %v29_v23  ;;  %v36_v31 = vrot.slane %v11_v24, %v35_v28  ;;  %vm148_vm1 = vcmp.eq.s32.totalorder %v147_v53, 64 }
   0x8   :  { %184 = vmatprep.subr.mxu0 %v228_v2  ;;  %v58_v37 = vrot.slane %v11_v24, %v57_v36  ;;  %v133_v42 = vrot.slane %v11_v24, %v132_v41  ;;  %v140_v46 = vrot.slane %v11_v24, %v139_v45 }
   0x9   :  { %185 = vmatpush3.msra.mxu0 %v51_v6 }
   0xa   :  { %186 = vmatprep.subr.mxu0 %v228_v2 }
   0xb   :  { %187 = vmatpush3.msra.mxu0 %v50_v8  ;;  %220 = vset.pattern.permute.xlu0 %v227_v0 }
   0xc   :  { %188 = vmatprep.subr.mxu0 %v228_v2 }
   0xd   :  { %189 = vmatpush3.msra.mxu0 %v49_v9 }
   0xe   :  { %190 = vmatprep.subr.mxu0 %v228_v2 }
   0xf   :  { %191 = vmatpush3.msra.mxu0 %v48_v10 }
  0x10   :  { %192 = vmatprep.subr.mxu0 %v228_v2 }
  0x11   :  { %193 = vmatpush3.msra.mxu0 %v47_v11 }
  0x12   :  { %194 = vmatprep.subr.mxu0 %v228_v2 }
  0x13   :  { %195 = vmatpush3.msra.mxu0 %v46_v12 }
  0x14   :  { %196 = vmatprep.subr.mxu0 %v228_v2 }
  0x15   :  { %197 = vmatpush3.msra.mxu0 %v45_v13 }
  0x16   :  { %198 = vmatprep.subr.mxu0 %v228_v2 }
  0x17   :  { %199 = vmatpush3.msra.mxu0 %v44_v14 }
  0x18   :  { %200 = vmatprep.subr.mxu0 %v228_v2 }
  0x19   :  { %201 = vmatpush3.msra.mxu0 %v43_v15 }
  0x1a   :  { %202 = vmatprep.subr.mxu0 %v228_v2 }
  0x1b   :  { %203 = vmatpush3.msra.mxu0 %v42_v16 }
  0x1c   :  { %204 = vmatprep.subr.mxu0 %v228_v2 }
  0x1d   :  { %205 = vmatpush3.msra.mxu0 %v41_v17 }
  0x1e   :  { %206 = vmatprep.subr.mxu0 %v228_v2 }
  0x1f   :  { %207 = vmatpush3.msra.mxu0 %v40_v18 }
  0x20   :  { %208 = vmatprep.subr.mxu0 %v228_v2 }
  0x21   :  { %209 = vmatpush3.msra.mxu0 %v39_v19 }
  0x7d   :  { %v16_v25 = vpop.permute.xlu0 %15 }
  0x7e   :  { %v22_v30 = vmul.f32 %v21_v26, %v16_v25 }
  0x82   :  { %v25_v29 = vpop.permute.xlu0 %24 }
  0x83   :  { %v31_v32 = vmul.f32 %v30_v27, %v25_v29 }
  0x85   :  { %v32_v33 = vadd.f32 %v31_v32, %v22_v30 }
  0x87   :  { %v37_v34 = vadd.f32 %v36_v31, %v32_v33 }
  0x89   :  { %221 = vtanh.f32 %v37_v34 }
  0x96   :  { %v222_v35 = vpop.eup %221 }
  0x97   :  { %211 = vmatmul.mubr.f32.vlgmr.msra.gmra.mxu0 %v222_v35 }
 0x157   :  { %v125_v38 = vpop.f32.mrf.mxu0 }
 0x158   :  { %v126_v39 = vadd.f32 %v125_v38, %v58_v37 }
 0x159   :  { %v212_v40 = vpop.f32.mrf.mxu0 }
 0x15a   :  { %223 = vtanh.f32 %v126_v39 }
 0x167   :  { %v224_v43 = vpop.eup %223 }
 0x168   :  { %v134_v44 = vmul.f32 %v224_v43, %v133_v42  ;;  %v149_v54 = vadd.f32 %v224_v43, %v222_v35 }
 0x16a   :  { %135 = vadd.xlane.f32.xlu1 %v134_v44 }
 0x1f3   :  { %v136_v47 = vpop.xlane.xlu1 %135 }
 0x1f4   :  { %v141_v48 = vadd.f32 %v140_v46, %v136_v47 }
 0x1f6   :  { %v142_v49 = vmul.f32 0.5, %v141_v48 }
 0x1f8   :  { %225 = vtanh.f32 %v142_v49 }
 0x205   :  { %v226_v50 = vpop.eup %225 }
 0x206   :  { %v144_v51 = vadd.f32 1.0, %v226_v50 }
 0x208   :  { %v145_v52 = vmul.f32 0.5, %v144_v51 }
 0x20a   :  { %152 = vperm.xlu1 %219, %v145_v52  }
 0x285   :  { %v153_v55 = vpop.permute.xlu1 %152 }
 0x286   :  { %v155_v56 = vsel %vm148_vm1, %v153_v55, %v149_v54 }
 0x287   :  { %156 = vst [vmem:[%s305_s2] sm:$0xff] %v155_v56 }

</bundles_post_ra>
